<compile_context>
chip_gen: v5e
topology: v5e:2x2
jax: 0.10.0
libtpu: 0.0.40
codegen_flags: <defaults>
</compile_context>

<pallas_src>
import functools
import math

import jax
import jax.numpy as jnp
from jax.experimental import pallas as pl
from jax.experimental.pallas import tpu as pltpu


_HALF_LOG_2PI = 0.5 * math.log(2.0 * math.pi)
_VAR_EPS = 1e-8   # clamp for posterior variance (qS - Kuu round-off can dip < 0)


# ----------------------------------------------------------------------------
# Capability probe: stride-0 sublane-broadcast loads (pl.ds(..., stride=0)).
# ----------------------------------------------------------------------------
_STRIDE0_BCAST_OK = None


def _stride0_broadcast_supported():
  """Probe (once) whether ref[pl.ds(k, S, stride=0), :] is a correct broadcast."""
  global _STRIDE0_BCAST_OK
  if _STRIDE0_BCAST_OK is None:
    try:
      def _probe_kernel(x_ref, o_ref):
        o_ref[...] = x_ref[pl.ds(3, 8, stride=0), :]

      x = jnp.arange(8 * 128, dtype=jnp.float32).reshape(8, 128)
      out = pl.pallas_call(
          _probe_kernel,
          out_shape=jax.ShapeDtypeStruct((8, 128), jnp.float32))(x)
      _STRIDE0_BCAST_OK = bool(jnp.all(out == x[3:4, :]))
    except Exception:  # old API (stride >= 1 enforced) or lowering failure
      _STRIDE0_BCAST_OK = False
  return _STRIDE0_BCAST_OK


# ----------------------------------------------------------------------------
# Pallas kernel: fused per-point GP posterior (f and g heads) + variational
# expectation of the heteroscedastic Gaussian likelihood, reduced per tile.
# ----------------------------------------------------------------------------
def _chained_gp_expectation_kernel(
    hyper_ref,                                   # (4,) f32 in SMEM
    xT_ref, yT_ref, z_ref,                       # data / inducing inputs
    w_f_ref, C_f_ref, w_g_ref, C_g_ref,          # folded variational params
    out_ref,                                     # (1, 128) partial sum
    kuf_f_sc, kuf_g_sc,                          # (M, TN) VMEM scratch per head
    *, use_stride0_bcast):
  xT = xT_ref[...]                        # (D, TN)  points on the lane axis
  z = z_ref[...]                          # (M, D)
  D = xT.shape[0]
  M = z.shape[0]
  TN = xT.shape[1]

  # Shared squared distances d2[j, n] = sum_d (x[d, n] - z[j, d])^2, computed
  # directly on the VPU (no K=1 MXU outer product, no ||.||^2 cancellation).
  d2 = None
  for d in range(D):                      # D is tiny and static -- unrolled
    diff = xT[d:d + 1, :] - z[:, d:d + 1]            # (1,TN) - (M,1) -> (M, TN)
    sq = diff * diff
    d2 = sq if d2 is None else d2 + sq

  def head(var, neg_half_inv_ls2, w_ref, C_ref, kuf_sc):
    # RBF cross covariance K(z, x)^T; diag(K(x, x)) == var for the RBF kernel.
    KufT = var * jnp.exp(d2 * neg_half_inv_ls2)                  # (M, TN)

    # Posterior mean: m = w^T Kuf  (one lane-broadcast + one sublane reduce).
    m = jnp.sum(w_ref[...] * KufT, axis=0, keepdims=True)        # (1, TN)

    # Posterior variance: v = var + diag(Kfu C Kuf) with C = iKuu (qS-Kuu) iKuu
    # folded on the host.  CK = C @ KufT is unrolled on the VPU; the row
    # operand KufT[k, :] comes back from VMEM scratch via a stride-0
    # sublane-broadcast load (no XLU relayout) when supported.
    C = C_ref[...]                                               # (M, M)
    if use_stride0_bcast:
      kuf_sc[...] = KufT
      def row_bcast(k):
        return kuf_sc[pl.ds(k, M, stride=0), :]                  # (M, TN)
    else:
      def row_bcast(k):
        return KufT[k:k + 1, :]                                  # (1, TN) -> bcast
    CK = None
    for k in range(M):                    # M is tiny and static -- unrolled
      term = C[:, k:k + 1] * row_bcast(k)                        # (M, TN)
      CK = term if CK is None else CK + term
    v = var + jnp.sum(CK * KufT, axis=0, keepdims=True)          # (1, TN)
    return m, jnp.maximum(v, _VAR_EPS)

  var_f = hyper_ref[0]
  scale_f = hyper_ref[1]                  # -0.5 / ls_f^2
  var_g = hyper_ref[2]
  scale_g = hyper_ref[3]                  # -0.5 / ls_g^2

  # TODO(synk): bf16 exp on the EUP (v6e/v7x) is a possible further win but is
  # cancellation-sensitive on the variance path; kept in f32.
  m_f, v_f = head(var_f, scale_f, w_f_ref, C_f_ref, kuf_f_sc)
  m_g, v_g = head(var_g, scale_g, w_g_ref, C_g_ref, kuf_g_sc)

  yT = yT_ref[...]                                               # (1, TN)
  # E_q[log N(y | f, exp(g))] with q(f)=N(m_f, v_f), q(g)=N(m_g, v_g):
  #   -0.5 log(2*pi) - 0.5 m_g - 0.5 exp(-m_g + v_g/2) * ((y - m_f)^2 + v_f)
  exp_n = (-_HALF_LOG_2PI - 0.5 * m_g
           - 0.5 * jnp.exp(-m_g + 0.5 * v_g) * ((yT - m_f) ** 2 + v_f))  # (1,TN)

  # Per-tile partial sum folded into a single lane-dense (1, 128) row so the
  # store is an unmasked vst (128-aligned static lane slices; no relayout).
  partial = exp_n[:, 0:128]
  for c in range(1, TN // 128):
    partial = partial + exp_n[:, c * 128:(c + 1) * 128]
  out_ref[...] = partial


# ----------------------------------------------------------------------------
# Tile selection helpers
# ----------------------------------------------------------------------------
def _default_num_tc():
  """2 for dual-TensorCore chips (v7x, v4/v5p megacore), 1 for v5e/v6e."""
  try:
    kind = jax.devices()[0].device_kind.lower()
    if any(s in kind for s in ("v5 lite", "v5e", "v5lite", "v6 lite", "v6e")):
      return 1
  except Exception:
    pass
  return 2   # harmless on single-TC chips (one extra ~0.35us grid step)


def _pick_tile_n(n, num_tc, cap=2048):
  """Largest 128-multiple tile <= cap dividing n with a tile count that keeps
  every TensorCore busy (num_tiles % num_tc == 0), falling back gracefully."""
  assert n % 128 == 0, "N must be a multiple of 128"
  best = None
  t = 128
  while t <= min(n, cap):
    if n % t == 0:
      nt = n // t
      if num_tc == 1 or nt % num_tc == 0:
        best = t
    t += 128
  if best is None:                         # e.g. N == 128 with num_tc == 2
    t = 128
    while t <= min(n, cap):
      if n % t == 0:
        best = t
      t += 128
  return best


# ----------------------------------------------------------------------------
# Pallas wrapper
# ----------------------------------------------------------------------------
def variational_expectations_pallas(x, y, z, w_f, C_f, w_g, C_g,
                                    var_f, ls_f, var_g, ls_g,
                                    *, tile_n=None, num_tc=None):
  """Returns lane-dense per-tile partial sums; sum() == sum of expectations."""
  N, D = x.shape
  M = z.shape[0]
  if num_tc is None:
    num_tc = _default_num_tc()
  if tile_n is None:
    tile_n = _pick_tile_n(N, num_tc)
  assert tile_n % 128 == 0, "tile_n must be a multiple of the 128-lane width"
  assert N % tile_n == 0, "N must be divisible by tile_n"
  num_tiles = N // tile_n

  # Layout plumbing: data points onto the lane (last) axis.  For D == 1 (and
  # the single-column y) a reshape is layout-identical -- no relayout copy.
  xT = x.reshape(1, N) if D == 1 else jnp.transpose(x)
  # TODO(synk): for D > 1, accept x already as (D, N) upstream (or use
  # allow_input_fusion) to avoid the standalone XLA transpose at large N.
  yT = y.reshape(1, N)

  # Hyperparameters as dynamic SMEM scalars: traceable, no recompile on change.
  var_f = jnp.asarray(var_f, dtype=jnp.float32)
  ls_f = jnp.asarray(ls_f, dtype=jnp.float32)
  var_g = jnp.asarray(var_g, dtype=jnp.float32)
  ls_g = jnp.asarray(ls_g, dtype=jnp.float32)
  hyper_smem = jnp.stack(
      [var_f, -0.5 / (ls_f * ls_f), var_g, -0.5 / (ls_g * ls_g)])

  kernel = functools.partial(
      _chained_gp_expectation_kernel,
      use_stride0_bcast=_stride0_broadcast_supported())

  def invariant(shape):
    # Grid-invariant small operands (constant index_map): Pallas skips the
    # re-DMA when the block index does not change between grid steps.
    return pl.BlockSpec(shape, lambda i: (0, 0))

  # Advisory cost estimate so XLA can overlap the surrounding solve/Cholesky glue.
  flops = int(N * (3 * M * D + 2 * (2 * M * M + 6 * M) + 12))
  transcendentals = int(N * (2 * M + 1))
  bytes_accessed = int(4 * (N * (D + 1) + M * D + 2 * (M * M + M)
                            + num_tiles * 128 + 4))

  return pl.pallas_call(
      kernel,
      out_shape=jax.ShapeDtypeStruct((1, num_tiles * 128), jnp.float32),
      grid_spec=pltpu.PrefetchScalarGridSpec(
          num_scalar_prefetch=0,
          grid=(num_tiles,),
          in_specs=[
              pl.BlockSpec(memory_space=pltpu.MemorySpace.SMEM),  # hyper scalars
              pl.BlockSpec((D, tile_n), lambda i: (0, i)),        # x^T
              pl.BlockSpec((1, tile_n), lambda i: (0, i)),        # y^T
              invariant((M, D)),                                  # z
              invariant((M, 1)), invariant((M, M)),               # w_f, C_f
              invariant((M, 1)), invariant((M, M)),               # w_g, C_g
          ],
          out_specs=pl.BlockSpec((1, 128), lambda i: (0, i)),
          scratch_shapes=[pltpu.VMEM((M, tile_n), jnp.float32),
                          pltpu.VMEM((M, tile_n), jnp.float32)],
      ),
      compiler_params=pltpu.CompilerParams(
          dimension_semantics=("parallel",)),
      cost_estimate=pl.CostEstimate(
          flops=flops, transcendentals=transcendentals,
          bytes_accessed=bytes_accessed),
  )(hyper_smem, xT, yT, z, w_f, C_f, w_g, C_g)


# ----------------------------------------------------------------------------
# Plain-JAX glue (small M x M linear algebra, parameter setup, KL terms)
# ----------------------------------------------------------------------------
def rbf_K(a, b, var, ls):
  a2 = jnp.sum(a * a, axis=-1, keepdims=True)
  b2 = jnp.sum(b * b, axis=-1, keepdims=True)
  d2 = jnp.maximum(a2 + b2.T - 2.0 * (a @ b.T), 0.0)
  return var * jnp.exp(-0.5 * d2 / (ls * ls))


def kl_mvn_zero_mean_prior(q_m, q_S, p_S):
  """KL( N(q_m, q_S) || N(0, p_S) )."""
  M = q_m.shape[0]
  Lp = jnp.linalg.cholesky(p_S)
  Lq = jnp.linalg.cholesky(q_S)
  iP_qS = jax.scipy.linalg.cho_solve((Lp, True), q_S)
  tr_term = jnp.trace(iP_qS)
  alpha = jax.scipy.linalg.cho_solve((Lp, True), q_m)
  quad = jnp.sum(q_m * alpha)
  logdet_p = 2.0 * jnp.sum(jnp.log(jnp.diag(Lp)))
  logdet_q = 2.0 * jnp.sum(jnp.log(jnp.diag(Lq)))
  return 0.5 * (tr_term + quad - M + logdet_p - logdet_q)


def chained_gp_neg_elbo(x, y, params, hyper, batch_rate=1.0, tile_n=None,
                        expectation_fn=variational_expectations_pallas):
  var_f, ls_f, var_g, ls_g = hyper
  z = params["z"]
  M = z.shape[0]

  q_L_f = jnp.tril(params["q_L_f"])
  q_S_f = q_L_f @ q_L_f.T
  q_L_g = jnp.tril(params["q_L_g"])
  q_S_g = q_L_g @ q_L_g.T
  q_m_f = params["q_m_f"]
  q_m_g = params["q_m_g"]

  Kuu_f = rbf_K(z, z, var_f, ls_f)
  Kuu_g = rbf_K(z, z, var_g, ls_g)

  # TODO(synk): the M x M inverse (torch.solve) and Cholesky-based MVN KL have
  # no clean Pallas equivalent; they stay in plain JAX (M is tiny).
  eyeM = jnp.eye(M, dtype=jnp.float32)
  iKuu_f = jnp.linalg.solve(Kuu_f, eyeM)
  iKuu_g = jnp.linalg.solve(Kuu_g, eyeM)

  # Fold iKuu into the variational parameters on the host (halves the per-tile
  # small-matmul work inside the Pallas kernel):
  #   m = Kfu @ (iKuu q_m)           = Kfu @ w
  #   v = var + diag(Kfu @ [iKuu (qS - Kuu) iKuu] @ Kuf) = var + diag(Kfu C Kuf)
  w_f = iKuu_f @ q_m_f
  w_g = iKuu_g @ q_m_g
  C_f = iKuu_f @ (q_S_f - Kuu_f) @ iKuu_f
  C_g = iKuu_g @ (q_S_g - Kuu_g) @ iKuu_g

  # TODO(synk): no custom_vjp on the Pallas expectation path; jax.grad for
  # training must route through variational_expectations_ref instead.
  exp_terms = expectation_fn(x, y, z, w_f, C_f, w_g, C_g,
                             var_f, ls_f, var_g, ls_g, tile_n=tile_n)

  kl = (kl_mvn_zero_mean_prior(q_m_f, q_S_f, Kuu_f)
        + kl_mvn_zero_mean_prior(q_m_g, q_S_g, Kuu_g))
  elbo = batch_rate * jnp.sum(exp_terms) - kl
  return -elbo


# Pure-JAX reference for the expectation path (mirrors the kernel math).
def variational_expectations_ref(x, y, z, w_f, C_f, w_g, C_g,
                                 var_f, ls_f, var_g, ls_g, **_):
  def posterior(w, C, var, ls):
    Kfu = rbf_K(x, z, var, ls)
    m = Kfu @ w
    v = var + jnp.sum((Kfu @ C) * Kfu, axis=-1, keepdims=True)
    return m, jnp.maximum(v, _VAR_EPS)

  m_f, v_f = posterior(w_f, C_f, var_f, ls_f)
  m_g, v_g = posterior(w_g, C_g, var_g, ls_g)
  return (-_HALF_LOG_2PI
          - 0.5 * m_g
          - 0.5 * jnp.exp(-m_g + 0.5 * v_g) * ((y - m_f) ** 2 + v_f))


# ----------------------------------------------------------------------------
# Main
# ----------------------------------------------------------------------------
if __name__ == "__main__":
  key = jax.random.PRNGKey(0)
  k_x, k_y, k_mf, k_mg = jax.random.split(key, 4)

  M = 8           # number of inducing points
  N = 512         # number of data points (on the lane axis inside the kernel)
  D = 1           # input_dim

  # Deterministic parameter init mirroring ChainedGP.__init__ (input_dim == 1).
  z = jnp.linspace(-0.9, 0.9, M, dtype=jnp.float32)[:, None]        # (M, 1)
  params = {
      "z": z,
      "q_m_f": 0.5 * jax.random.normal(k_mf, (M, 1), dtype=jnp.float32),
      "q_L_f": jnp.eye(M, dtype=jnp.float32),
      "q_m_g": 0.5 * jax.random.normal(k_mg, (M, 1), dtype=jnp.float32),
      "q_L_g": jnp.eye(M, dtype=jnp.float32),
  }
  # RBF kernel hyperparameters (variance, lengthscale) for kernel_f / kernel_g.
  hyper = (1.0, 0.3, 0.8, 0.4)

  x = jax.random.uniform(k_x, (N, D), dtype=jnp.float32,
                         minval=-1.0, maxval=1.0)
  y = 0.5 * jax.random.normal(k_y, (N, 1), dtype=jnp.float32)

  # tile_n=None -> auto: grid=1 on single-TC (v5e/v6e), even tile count on
  # dual-TC chips (v7x / megacore).
  neg_elbo = chained_gp_neg_elbo(x, y, params, hyper, batch_rate=1.0)
  neg_elbo = jax.block_until_ready(neg_elbo)

  neg_elbo_ref = chained_gp_neg_elbo(x, y, params, hyper, batch_rate=1.0,
                                     expectation_fn=variational_expectations_ref)
  neg_elbo_ref = jax.block_until_ready(neg_elbo_ref)

  assert jnp.isfinite(neg_elbo), "neg ELBO is not finite"
  assert jnp.allclose(neg_elbo, neg_elbo_ref, rtol=1e-3, atol=1e-2), (
      f"mismatch: pallas={float(neg_elbo)} ref={float(neg_elbo_ref)}")

  print("KERNEL_OK")
</pallas_src>

<mosaic_0001>
module attributes {stable_mosaic.version = 11 : i64} {
  func.func @_probe_kernel(%arg0: memref<8x128xf32, #tpu.memory_space<vmem>>, %arg1: memref<8x128xf32, #tpu.memory_space<vmem>>) attributes {dimension_semantics = [], scalar_prefetch = 0 : i64, scratch_operands = 0 : i64, tpu.core_type = #tpu.core_type<tc>} {
    %c3 = arith.constant 3 : index
    %c0 = arith.constant 0 : index
    %0 = tpu.strided_load %arg0[%c3, %c0] {strides = array<i32: 0, 1>} : memref<8x128xf32, #tpu.memory_space<vmem>>, vector<8x128xf32>
    %c0_0 = arith.constant 0 : index
    %c0_1 = arith.constant 0 : index
    %1 = vector.load %arg1[%c0_0, %c0_1] : memref<8x128xf32, #tpu.memory_space<vmem>>, vector<8x128xf32>
    tpu.vector_store %arg1[%c0_0, %c0_1], %0 {strides = array<i32>} : memref<8x128xf32, #tpu.memory_space<vmem>>, vector<8x128xf32>,
    return
  }
}

module attributes {stable_mosaic.version = 11 : i64} {
  func.func @_chained_gp_expectation_kernel(%arg0: i32, %arg1: memref<4xf32, #tpu.memory_space<smem>>, %arg2: memref<1x256xf32, #tpu.memory_space<vmem>>, %arg3: memref<1x256xf32, #tpu.memory_space<vmem>>, %arg4: memref<8x1xf32, #tpu.memory_space<vmem>>, %arg5: memref<8x1xf32, #tpu.memory_space<vmem>>, %arg6: memref<8x8xf32, #tpu.memory_space<vmem>>, %arg7: memref<8x1xf32, #tpu.memory_space<vmem>>, %arg8: memref<8x8xf32, #tpu.memory_space<vmem>>, %arg9: memref<1x128xf32, #tpu.memory_space<vmem>>, %arg10: memref<8x256xf32, #tpu.memory_space<vmem>>, %arg11: memref<8x256xf32, #tpu.memory_space<vmem>>) attributes {dimension_semantics = [#tpu.dimension_semantics<parallel>], iteration_bounds = array<i64: 2>, scalar_prefetch = 0 : i64, scratch_operands = 2 : i64, tpu.core_type = #tpu.core_type<tc>, window_params = [{transform_indices = @transform_0, window_bounds = array<i64: 4>}, {transform_indices = @transform_1, window_bounds = array<i64: 1, 256>}, {transform_indices = @transform_2, window_bounds = array<i64: 1, 256>}, {pipeline_mode = #tpu.pipeline_mode<synchronous>, transform_indices = @transform_3, window_bounds = array<i64: 8, 1>}, {pipeline_mode = #tpu.pipeline_mode<synchronous>, transform_indices = @transform_4, window_bounds = array<i64: 8, 1>}, {pipeline_mode = #tpu.pipeline_mode<synchronous>, transform_indices = @transform_5, window_bounds = array<i64: 8, 8>}, {pipeline_mode = #tpu.pipeline_mode<synchronous>, transform_indices = @transform_6, window_bounds = array<i64: 8, 1>}, {pipeline_mode = #tpu.pipeline_mode<synchronous>, transform_indices = @transform_7, window_bounds = array<i64: 8, 8>}, {transform_indices = @transform_8, window_bounds = array<i64: 1, 128>}]} {
    %c0 = arith.constant 0 : index
    %c0_0 = arith.constant 0 : index
    %0 = vector.load %arg2[%c0, %c0_0] : memref<1x256xf32, #tpu.memory_space<vmem>>, vector<1x256xf32>
    %c0_1 = arith.constant 0 : index
    %c0_2 = arith.constant 0 : index
    %1 = vector.load %arg4[%c0_1, %c0_2] : memref<8x1xf32, #tpu.memory_space<vmem>>, vector<8x1xf32>
    %2 = vector.broadcast %0 : vector<1x256xf32> to vector<8x256xf32>
    %3 = vector.broadcast %1 : vector<8x1xf32> to vector<8x256xf32>
    %4 = arith.subf %2, %3 : vector<8x256xf32>
    %5 = arith.mulf %4, %4 : vector<8x256xf32>
    %c0_3 = arith.constant 0 : index
    %6 = memref.load %arg1[%c0_3] : memref<4xf32, #tpu.memory_space<smem>>
    %c1 = arith.constant 1 : index
    %7 = memref.load %arg1[%c1] : memref<4xf32, #tpu.memory_space<smem>>
    %c2 = arith.constant 2 : index
    %8 = memref.load %arg1[%c2] : memref<4xf32, #tpu.memory_space<smem>>
    %c3 = arith.constant 3 : index
    %9 = memref.load %arg1[%c3] : memref<4xf32, #tpu.memory_space<smem>>
    %10 = vector.broadcast %7 : f32 to vector<8x256xf32>
    %11 = arith.mulf %5, %10 : vector<8x256xf32>
    %12 = math.exp %11 : vector<8x256xf32>
    %13 = vector.broadcast %6 : f32 to vector<8x256xf32>
    %14 = arith.mulf %13, %12 : vector<8x256xf32>
    %c0_4 = arith.constant 0 : index
    %c0_5 = arith.constant 0 : index
    %15 = vector.load %arg5[%c0_4, %c0_5] : memref<8x1xf32, #tpu.memory_space<vmem>>, vector<8x1xf32>
    %16 = vector.broadcast %15 : vector<8x1xf32> to vector<8x256xf32>
    %17 = arith.mulf %16, %14 : vector<8x256xf32>
    %cst = arith.constant dense<0.000000e+00> : vector<256xf32>
    %18 = vector.multi_reduction <add>, %17, %cst [0] : vector<8x256xf32> to vector<256xf32>
    %19 = vector.shape_cast %18 : vector<256xf32> to vector<1x256xf32>
    %c0_6 = arith.constant 0 : index
    %c0_7 = arith.constant 0 : index
    %20 = vector.load %arg6[%c0_6, %c0_7] : memref<8x8xf32, #tpu.memory_space<vmem>>, vector<8x8xf32>
    %21 = vector.extract_strided_slice %20 {offsets = [0, 0], sizes = [8, 1], strides = [1, 1]} : vector<8x8xf32> to vector<8x1xf32>
    %22 = vector.extract_strided_slice %14 {offsets = [0, 0], sizes = [1, 256], strides = [1, 1]} : vector<8x256xf32> to vector<1x256xf32>
    %23 = vector.broadcast %21 : vector<8x1xf32> to vector<8x256xf32>
    %24 = vector.broadcast %22 : vector<1x256xf32> to vector<8x256xf32>
    %25 = arith.mulf %23, %24 : vector<8x256xf32>
    %26 = vector.extract_strided_slice %20 {offsets = [0, 1], sizes = [8, 1], strides = [1, 1]} : vector<8x8xf32> to vector<8x1xf32>
    %27 = vector.extract_strided_slice %14 {offsets = [1, 0], sizes = [1, 256], strides = [1, 1]} : vector<8x256xf32> to vector<1x256xf32>
    %28 = vector.broadcast %26 : vector<8x1xf32> to vector<8x256xf32>
    %29 = vector.broadcast %27 : vector<1x256xf32> to vector<8x256xf32>
    %30 = arith.mulf %28, %29 : vector<8x256xf32>
    %31 = arith.addf %25, %30 : vector<8x256xf32>
    %32 = vector.extract_strided_slice %20 {offsets = [0, 2], sizes = [8, 1], strides = [1, 1]} : vector<8x8xf32> to vector<8x1xf32>
    %33 = vector.extract_strided_slice %14 {offsets = [2, 0], sizes = [1, 256], strides = [1, 1]} : vector<8x256xf32> to vector<1x256xf32>
    %34 = vector.broadcast %32 : vector<8x1xf32> to vector<8x256xf32>
    %35 = vector.broadcast %33 : vector<1x256xf32> to vector<8x256xf32>
    %36 = arith.mulf %34, %35 : vector<8x256xf32>
    %37 = arith.addf %31, %36 : vector<8x256xf32>
    %38 = vector.extract_strided_slice %20 {offsets = [0, 3], sizes = [8, 1], strides = [1, 1]} : vector<8x8xf32> to vector<8x1xf32>
    %39 = vector.extract_strided_slice %14 {offsets = [3, 0], sizes = [1, 256], strides = [1, 1]} : vector<8x256xf32> to vector<1x256xf32>
    %40 = vector.broadcast %38 : vector<8x1xf32> to vector<8x256xf32>
    %41 = vector.broadcast %39 : vector<1x256xf32> to vector<8x256xf32>
    %42 = arith.mulf %40, %41 : vector<8x256xf32>
    %43 = arith.addf %37, %42 : vector<8x256xf32>
    %44 = vector.extract_strided_slice %20 {offsets = [0, 4], sizes = [8, 1], strides = [1, 1]} : vector<8x8xf32> to vector<8x1xf32>
    %45 = vector.extract_strided_slice %14 {offsets = [4, 0], sizes = [1, 256], strides = [1, 1]} : vector<8x256xf32> to vector<1x256xf32>
    %46 = vector.broadcast %44 : vector<8x1xf32> to vector<8x256xf32>
    %47 = vector.broadcast %45 : vector<1x256xf32> to vector<8x256xf32>
    %48 = arith.mulf %46, %47 : vector<8x256xf32>
    %49 = arith.addf %43, %48 : vector<8x256xf32>
    %50 = vector.extract_strided_slice %20 {offsets = [0, 5], sizes = [8, 1], strides = [1, 1]} : vector<8x8xf32> to vector<8x1xf32>
    %51 = vector.extract_strided_slice %14 {offsets = [5, 0], sizes = [1, 256], strides = [1, 1]} : vector<8x256xf32> to vector<1x256xf32>
    %52 = vector.broadcast %50 : vector<8x1xf32> to vector<8x256xf32>
    %53 = vector.broadcast %51 : vector<1x256xf32> to vector<8x256xf32>
    %54 = arith.mulf %52, %53 : vector<8x256xf32>
    %55 = arith.addf %49, %54 : vector<8x256xf32>
    %56 = vector.extract_strided_slice %20 {offsets = [0, 6], sizes = [8, 1], strides = [1, 1]} : vector<8x8xf32> to vector<8x1xf32>
    %57 = vector.extract_strided_slice %14 {offsets = [6, 0], sizes = [1, 256], strides = [1, 1]} : vector<8x256xf32> to vector<1x256xf32>
    %58 = vector.broadcast %56 : vector<8x1xf32> to vector<8x256xf32>
    %59 = vector.broadcast %57 : vector<1x256xf32> to vector<8x256xf32>
    %60 = arith.mulf %58, %59 : vector<8x256xf32>
    %61 = arith.addf %55, %60 : vector<8x256xf32>
    %62 = vector.extract_strided_slice %20 {offsets = [0, 7], sizes = [8, 1], strides = [1, 1]} : vector<8x8xf32> to vector<8x1xf32>
    %63 = vector.extract_strided_slice %14 {offsets = [7, 0], sizes = [1, 256], strides = [1, 1]} : vector<8x256xf32> to vector<1x256xf32>
    %64 = vector.broadcast %62 : vector<8x1xf32> to vector<8x256xf32>
    %65 = vector.broadcast %63 : vector<1x256xf32> to vector<8x256xf32>
    %66 = arith.mulf %64, %65 : vector<8x256xf32>
    %67 = arith.addf %61, %66 : vector<8x256xf32>
    %68 = arith.mulf %67, %14 : vector<8x256xf32>
    %cst_8 = arith.constant dense<0.000000e+00> : vector<256xf32>
    %69 = vector.multi_reduction <add>, %68, %cst_8 [0] : vector<8x256xf32> to vector<256xf32>
    %70 = vector.shape_cast %69 : vector<256xf32> to vector<1x256xf32>
    %71 = vector.broadcast %6 : f32 to vector<1x256xf32>
    %72 = arith.addf %71, %70 : vector<1x256xf32>
    %cst_9 = arith.constant 9.99999993E-9 : f32
    %73 = vector.broadcast %cst_9 : f32 to vector<1x256xf32>
    %74 = arith.maximumf %72, %73 : vector<1x256xf32>
    %75 = vector.broadcast %9 : f32 to vector<8x256xf32>
    %76 = arith.mulf %5, %75 : vector<8x256xf32>
    %77 = math.exp %76 : vector<8x256xf32>
    %78 = vector.broadcast %8 : f32 to vector<8x256xf32>
    %79 = arith.mulf %78, %77 : vector<8x256xf32>
    %c0_10 = arith.constant 0 : index
    %c0_11 = arith.constant 0 : index
    %80 = vector.load %arg7[%c0_10, %c0_11] : memref<8x1xf32, #tpu.memory_space<vmem>>, vector<8x1xf32>
    %81 = vector.broadcast %80 : vector<8x1xf32> to vector<8x256xf32>
    %82 = arith.mulf %81, %79 : vector<8x256xf32>
    %cst_12 = arith.constant dense<0.000000e+00> : vector<256xf32>
    %83 = vector.multi_reduction <add>, %82, %cst_12 [0] : vector<8x256xf32> to vector<256xf32>
    %84 = vector.shape_cast %83 : vector<256xf32> to vector<1x256xf32>
    %c0_13 = arith.constant 0 : index
    %c0_14 = arith.constant 0 : index
    %85 = vector.load %arg8[%c0_13, %c0_14] : memref<8x8xf32, #tpu.memory_space<vmem>>, vector<8x8xf32>
    %86 = vector.extract_strided_slice %85 {offsets = [0, 0], sizes = [8, 1], strides = [1, 1]} : vector<8x8xf32> to vector<8x1xf32>
    %87 = vector.extract_strided_slice %79 {offsets = [0, 0], sizes = [1, 256], strides = [1, 1]} : vector<8x256xf32> to vector<1x256xf32>
    %88 = vector.broadcast %86 : vector<8x1xf32> to vector<8x256xf32>
    %89 = vector.broadcast %87 : vector<1x256xf32> to vector<8x256xf32>
    %90 = arith.mulf %88, %89 : vector<8x256xf32>
    %91 = vector.extract_strided_slice %85 {offsets = [0, 1], sizes = [8, 1], strides = [1, 1]} : vector<8x8xf32> to vector<8x1xf32>
    %92 = vector.extract_strided_slice %79 {offsets = [1, 0], sizes = [1, 256], strides = [1, 1]} : vector<8x256xf32> to vector<1x256xf32>
    %93 = vector.broadcast %91 : vector<8x1xf32> to vector<8x256xf32>
    %94 = vector.broadcast %92 : vector<1x256xf32> to vector<8x256xf32>
    %95 = arith.mulf %93, %94 : vector<8x256xf32>
    %96 = arith.addf %90, %95 : vector<8x256xf32>
    %97 = vector.extract_strided_slice %85 {offsets = [0, 2], sizes = [8, 1], strides = [1, 1]} : vector<8x8xf32> to vector<8x1xf32>
    %98 = vector.extract_strided_slice %79 {offsets = [2, 0], sizes = [1, 256], strides = [1, 1]} : vector<8x256xf32> to vector<1x256xf32>
    %99 = vector.broadcast %97 : vector<8x1xf32> to vector<8x256xf32>
    %100 = vector.broadcast %98 : vector<1x256xf32> to vector<8x256xf32>
    %101 = arith.mulf %99, %100 : vector<8x256xf32>
    %102 = arith.addf %96, %101 : vector<8x256xf32>
    %103 = vector.extract_strided_slice %85 {offsets = [0, 3], sizes = [8, 1], strides = [1, 1]} : vector<8x8xf32> to vector<8x1xf32>
    %104 = vector.extract_strided_slice %79 {offsets = [3, 0], sizes = [1, 256], strides = [1, 1]} : vector<8x256xf32> to vector<1x256xf32>
    %105 = vector.broadcast %103 : vector<8x1xf32> to vector<8x256xf32>
    %106 = vector.broadcast %104 : vector<1x256xf32> to vector<8x256xf32>
    %107 = arith.mulf %105, %106 : vector<8x256xf32>
    %108 = arith.addf %102, %107 : vector<8x256xf32>
    %109 = vector.extract_strided_slice %85 {offsets = [0, 4], sizes = [8, 1], strides = [1, 1]} : vector<8x8xf32> to vector<8x1xf32>
    %110 = vector.extract_strided_slice %79 {offsets = [4, 0], sizes = [1, 256], strides = [1, 1]} : vector<8x256xf32> to vector<1x256xf32>
    %111 = vector.broadcast %109 : vector<8x1xf32> to vector<8x256xf32>
    %112 = vector.broadcast %110 : vector<1x256xf32> to vector<8x256xf32>
    %113 = arith.mulf %111, %112 : vector<8x256xf32>
    %114 = arith.addf %108, %113 : vector<8x256xf32>
    %115 = vector.extract_strided_slice %85 {offsets = [0, 5], sizes = [8, 1], strides = [1, 1]} : vector<8x8xf32> to vector<8x1xf32>
    %116 = vector.extract_strided_slice %79 {offsets = [5, 0], sizes = [1, 256], strides = [1, 1]} : vector<8x256xf32> to vector<1x256xf32>
    %117 = vector.broadcast %115 : vector<8x1xf32> to vector<8x256xf32>
    %118 = vector.broadcast %116 : vector<1x256xf32> to vector<8x256xf32>
    %119 = arith.mulf %117, %118 : vector<8x256xf32>
    %120 = arith.addf %114, %119 : vector<8x256xf32>
    %121 = vector.extract_strided_slice %85 {offsets = [0, 6], sizes = [8, 1], strides = [1, 1]} : vector<8x8xf32> to vector<8x1xf32>
    %122 = vector.extract_strided_slice %79 {offsets = [6, 0], sizes = [1, 256], strides = [1, 1]} : vector<8x256xf32> to vector<1x256xf32>
    %123 = vector.broadcast %121 : vector<8x1xf32> to vector<8x256xf32>
    %124 = vector.broadcast %122 : vector<1x256xf32> to vector<8x256xf32>
    %125 = arith.mulf %123, %124 : vector<8x256xf32>
    %126 = arith.addf %120, %125 : vector<8x256xf32>
    %127 = vector.extract_strided_slice %85 {offsets = [0, 7], sizes = [8, 1], strides = [1, 1]} : vector<8x8xf32> to vector<8x1xf32>
    %128 = vector.extract_strided_slice %79 {offsets = [7, 0], sizes = [1, 256], strides = [1, 1]} : vector<8x256xf32> to vector<1x256xf32>
    %129 = vector.broadcast %127 : vector<8x1xf32> to vector<8x256xf32>
    %130 = vector.broadcast %128 : vector<1x256xf32> to vector<8x256xf32>
    %131 = arith.mulf %129, %130 : vector<8x256xf32>
    %132 = arith.addf %126, %131 : vector<8x256xf32>
    %133 = arith.mulf %132, %79 : vector<8x256xf32>
    %cst_15 = arith.constant dense<0.000000e+00> : vector<256xf32>
    %134 = vector.multi_reduction <add>, %133, %cst_15 [0] : vector<8x256xf32> to vector<256xf32>
    %135 = vector.shape_cast %134 : vector<256xf32> to vector<1x256xf32>
    %136 = vector.broadcast %8 : f32 to vector<1x256xf32>
    %137 = arith.addf %136, %135 : vector<1x256xf32>
    %cst_16 = arith.constant 9.99999993E-9 : f32
    %138 = vector.broadcast %cst_16 : f32 to vector<1x256xf32>
    %139 = arith.maximumf %137, %138 : vector<1x256xf32>
    %c0_17 = arith.constant 0 : index
    %c0_18 = arith.constant 0 : index
    %140 = vector.load %arg3[%c0_17, %c0_18] : memref<1x256xf32, #tpu.memory_space<vmem>>, vector<1x256xf32>
    %cst_19 = arith.constant 5.000000e-01 : f32
    %141 = vector.broadcast %cst_19 : f32 to vector<1x256xf32>
    %142 = arith.mulf %141, %84 : vector<1x256xf32>
    %cst_20 = arith.constant -0.918938517 : f32
    %143 = vector.broadcast %cst_20 : f32 to vector<1x256xf32>
    %144 = arith.subf %143, %142 : vector<1x256xf32>
    %cst_21 = arith.constant 0.000000e+00 : f32
    %145 = vector.broadcast %cst_21 : f32 to vector<1x256xf32>
    %146 = arith.subf %145, %84 : vector<1x256xf32>
    %cst_22 = arith.constant 5.000000e-01 : f32
    %147 = vector.broadcast %cst_22 : f32 to vector<1x256xf32>
    %148 = arith.mulf %147, %139 : vector<1x256xf32>
    %149 = arith.addf %146, %148 : vector<1x256xf32>
    %150 = math.exp %149 : vector<1x256xf32>
    %cst_23 = arith.constant 5.000000e-01 : f32
    %151 = vector.broadcast %cst_23 : f32 to vector<1x256xf32>
    %152 = arith.mulf %151, %150 : vector<1x256xf32>
    %153 = arith.subf %140, %19 : vector<1x256xf32>
    %154 = arith.mulf %153, %153 : vector<1x256xf32>
    %155 = arith.addf %154, %74 : vector<1x256xf32>
    %156 = arith.mulf %152, %155 : vector<1x256xf32>
    %157 = arith.subf %144, %156 : vector<1x256xf32>
    %158 = vector.extract_strided_slice %157 {offsets = [0, 0], sizes = [1, 128], strides = [1, 1]} : vector<1x256xf32> to vector<1x128xf32>
    %159 = vector.extract_strided_slice %157 {offsets = [0, 128], sizes = [1, 128], strides = [1, 1]} : vector<1x256xf32> to vector<1x128xf32>
    %160 = arith.addf %158, %159 : vector<1x128xf32>
    %c0_24 = arith.constant 0 : index
    %c0_25 = arith.constant 0 : index
    %161 = vector.load %arg9[%c0_24, %c0_25] : memref<1x128xf32, #tpu.memory_space<vmem>>, vector<1x128xf32>
    tpu.vector_store %arg9[%c0_24, %c0_25], %160 {strides = array<i32>} : memref<1x128xf32, #tpu.memory_space<vmem>>, vector<1x128xf32>,
    return
  }
  func.func @transform_0(%arg0: i32) -> i32 {
    %c0_i32 = arith.constant 0 : i32
    %c0_i32_0 = arith.constant 0 : i32
    return %c0_i32 : i32
  }
  func.func @transform_1(%arg0: i32) -> (i32, i32) {
    %c0_i32 = arith.constant 0 : i32
    %c0_i32_0 = arith.constant 0 : i32
    return %c0_i32, %arg0 : i32, i32
  }
  func.func @transform_2(%arg0: i32) -> (i32, i32) {
    %c0_i32 = arith.constant 0 : i32
    %c0_i32_0 = arith.constant 0 : i32
    return %c0_i32, %arg0 : i32, i32
  }
  func.func @transform_3(%arg0: i32) -> (i32, i32) {
    %c0_i32 = arith.constant 0 : i32
    %c0_i32_0 = arith.constant 0 : i32
    %c0_i32_1 = arith.constant 0 : i32
    return %c0_i32, %c0_i32_0 : i32, i32
  }
  func.func @transform_4(%arg0: i32) -> (i32, i32) {
    %c0_i32 = arith.constant 0 : i32
    %c0_i32_0 = arith.constant 0 : i32
    %c0_i32_1 = arith.constant 0 : i32
    return %c0_i32, %c0_i32_0 : i32, i32
  }
  func.func @transform_5(%arg0: i32) -> (i32, i32) {
    %c0_i32 = arith.constant 0 : i32
    %c0_i32_0 = arith.constant 0 : i32
    %c0_i32_1 = arith.constant 0 : i32
    return %c0_i32, %c0_i32_0 : i32, i32
  }
  func.func @transform_6(%arg0: i32) -> (i32, i32) {
    %c0_i32 = arith.constant 0 : i32
    %c0_i32_0 = arith.constant 0 : i32
    %c0_i32_1 = arith.constant 0 : i32
    return %c0_i32, %c0_i32_0 : i32, i32
  }
  func.func @transform_7(%arg0: i32) -> (i32, i32) {
    %c0_i32 = arith.constant 0 : i32
    %c0_i32_0 = arith.constant 0 : i32
    %c0_i32_1 = arith.constant 0 : i32
    return %c0_i32, %c0_i32_0 : i32, i32
  }
  func.func @transform_8(%arg0: i32) -> (i32, i32) {
    %c0_i32 = arith.constant 0 : i32
    %c0_i32_0 = arith.constant 0 : i32
    return %c0_i32, %arg0 : i32, i32
  }
}

</mosaic_0001>

<bundles_post_ra>
// kernel: tpu_custom_call.1
= control target key start
LH: loop header
LB: loop body
LE: loop exit
PB: predicated region body
PF: predicated region fallthrough
CT: control target
= control target key end

     0   :  { %6 = vsyncpa [#allocation3], 0  ;;  %s114_s0 = inlined_call_operand.hbm [shape: f32[8,128], index: 0, kind: input, shape index: {}]   ;;  %s115_s1 = inlined_call_operand.hbm [shape: f32[8,128], index: 1, kind: output, shape index: {}]  }
   0x1   :  { %7 = vsyncpa [#allocation4], 0  ;;  %s13_s8 = sshll.u32 %s114_s0, 4  ;;  %s96_s9 = smov [#allocation2]   ;;  %s14_s8 = int_to_ptr.hbm [resolvable:$true] %s13_s8 }
   0x2   :  { %s15_s10 = sshll.u32 %s96_s9, 4  ;;  %s16_s10 = int_to_ptr.vmem [resolvable:$true] %s15_s10 }
   0x3   :  { %18 = dma.hbm_to_vmem [thread:$0]  %s14_s8, 128, %s16_s10, [#allocation3]  }
   0x4   :  { %92 = dma.done.wait [#allocation3], 128  }
   0x5   :  { %93 = vsyncadd [#allocation3], 4294967168  ;;  %s97_s11 = smov [#allocation5]   ;;  %s32_s15 = sshll.u32 %s115_s1, 4  ;;  %v23_v0 = vld [vmem:[#allocation2 + $0x3] ss:$0 sm:$0xff]  ;;  %s33_s15 = int_to_ptr.hbm [resolvable:$true] %s32_s15 }
   0x6   :  { %s30_s12 = sshll.u32 %s97_s11, 4  ;;  %24 = vst [vmem:[#allocation5] sm:$0xff] %v23_v0  ;;  %s31_s12 = int_to_ptr.vmem [resolvable:$true] %s30_s12 }
   0x7   :  { %35 = dma.vmem_to_hbm [thread:$0]  %s31_s12, 128, %s33_s15, [#allocation4]  }
   0x8   :  { %94 = dma.done.wait [#allocation4], 128  }
   0x9   :  { %95 = vsyncadd [#allocation4], 4294967168 }
   0xa   :  { %40 = vsyncpa [#allocation3], 1 }
   0xb   :  { %41 = vsyncpa [#allocation4], 1 }

// kernel: tpu_custom_call.1
= control target key start
LH: loop header
LB: loop body
LE: loop exit
PB: predicated region body
PF: predicated region fallthrough
CT: control target
= control target key end

     0   :  { %13 = vsyncpa [#allocation6], 0  ;;  %s1177_s0 = inlined_call_operand.vmem [shape: f32[4], index: 0, kind: input, shape index: {}]   ;;  %s1178_s1 = inlined_call_operand.vmem [shape: f32[1,512], index: 1, kind: input, shape index: {}]   ;;  %s1179_s2 = inlined_call_operand.vmem [shape: f32[1,512], index: 2, kind: input, shape index: {}]   ;;  %s1180_s3 = inlined_call_operand.vmem [shape: f32[8,1], index: 3, kind: input, shape index: {}]   ;;  %s1181_s4 = inlined_call_operand.vmem [shape: f32[8,1], index: 4, kind: input, shape index: {}]   ;;  %s1182_s5 = inlined_call_operand.vmem [shape: f32[8,8], index: 5, kind: input, shape index: {}]   ;;  %s1183_s6 = inlined_call_operand.vmem [shape: f32[8,1], index: 6, kind: input, shape index: {}]   ;;  %s1184_s7 = inlined_call_operand.vmem [shape: f32[8,8], index: 7, kind: input, shape index: {}]   ;;  %s1185_s8 = inlined_call_operand.hbm [shape: f32[1,256], index: 8, kind: output, shape index: {}]  }
   0x1   :  { %14 = vsyncpa [#allocation5], 0 }
   0x2   :  { %16 = vsyncpa [#allocation5 + $0x1], 0  ;;  %s977_s27 = smov 0   ;;  %s979_s28 = smov 0  }
   0x3   :  { %s981_s29 = smov 0   ;;  %s983_s30 = smov 0  }
   0x4 LB: > { %s998_s9 = sadd.s32 4294967295, %s921_s30   ;;  %s739_s10 = sadd.s32 4294967294, %s921_s30   ;;  %s921_s30 = sphi %s983_s30, %s1191_s30   ;;  %s917_s29 = sphi %s981_s29, %s1190_s29   ;;  %s913_s28 = sphi %s979_s28, %s1189_s28   ;;  %s909_s27 = sphi %s977_s27, %s1188_s27  }
   0x5   : > { %s1002_s11 = sadd.s32 1, %s921_s30   ;;  %s207_s12 = sadd.s32 1, %s917_s29 }
   0x6   : > { %s204_s13 = ssub.s32 %s921_s30, %s1002_s11  ;;  %p217_p0 = scmp.ne.s32.totalorder %s917_s29, %s913_s28 }
   0x7   : > { %p205_p1 = scmp.eq.s32.totalorder %s204_s13, 0  ;;  %p218_p2 = scmp.eq.s32.totalorder %s998_s9, 1 }
   0x8   : > { %p223_p3 = scmp.ne.s32.totalorder %s913_s28, %s909_s27  ;;  %p224_p4 = scmp.eq.s32.totalorder %s739_s10, 1 }
   0x9   : > { %s1013_s14 = scalar_select %p205_p1, %s917_s29, %s207_s12  }
   0xa   : > { %p1015_p5 = por %p218_p2, %p217_p0  ;;  %p1019_p6 = por %p224_p4, %p223_p3 }
   0xb   : > { %p740_p7 = scmp.ge.s32.totalorder %s921_s30, 1  ;;  %p231_p8 = scmp.lt.s32.totalorder %s921_s30, 3 }
   0xc   : > { %p766_p9 = scmp.eq.s32.totalorder %s998_s9, 0  ;;  %s243_s19 = sshll.u32 %s1177_s0, 4  ;;  %s244_s19 = int_to_ptr.vmem [resolvable:$true] %s243_s19 }
   0xd   : > { %p232_p10 = pnand %p740_p7, %p231_p8  ;;  %s923_s20 = smov [#allocation4]  }
   0xf   : > { %p758_p11 = pneg %p232_p10  ;;  %287 = sbr.rel (%p232_p10) target bundleno = 234 (0xea), region = 52 }
  0x11   : > { %p759_p12 = pnand %p766_p9, %p758_p11 }
  0x13   : > { %761 = dma.vmem_to_smem (!%p759_p12), %s244_s19, 16, %s923_s20, [#allocation6]  }
  0x14   : > { %900 = dma.done.wait (%p766_p9), [#allocation6], 16  }
  0x15   : > { %902 = vsyncadd (%p766_p9), [#allocation6], 4294967280 }
  0x16   : > { %294 = sfence }
  0x17   : > { %v513_v0 = vld [vmem:[%s1184_s7] sm:$0xff]  ;;  %v924_v3 = vmov 0   ;;  %v925_v5 = vmov 1   ;;  %v926_v6 = vmov 2   ;;  %v927_v7 = vmov 4   ;;  %s745_s18 = sshll.u32 %s998_s9, 1  ;;  %s662_s19 = scalar_lea.hbm %s1185_s8, %s998_s9 }
  0x18   : > { %v385_v1 = vld [vmem:[%s1182_s5] sm:$0xff]  ;;  %813 = vset.pattern.permute.xlu2 %v924_v3  ;;  %811 = vset.pattern.permute.xlu1 %v924_v3  ;;  %v928_v8 = vmov 3   ;;  %v929_v9 = vmov 6   ;;  %v930_v10 = vmov 5   ;;  %v931_v11 = vmov 7   ;;  %p326_p13 = scmp.lt.s32.totalorder %s745_s18, 3 }
  0x19   : > { %v336_v2 = vld [vmem:[%s1180_s3] sm:$0xff]  ;;  %810 = vset.pattern.permute.xlu0 %v924_v3  ;;  %516 = vperm.xlu2 %813, %v513_v0   ;;  %s747_s22 = sld [smem:[#allocation4 + $0x1]]  ;;  %vm631_vm0 = vcmask 1040384   ;;  %s323_s13 = sand.u32 1, %s913_s28  }
  0x1a   : > { %388 = vperm.xlu1 %811, %v385_v1   ;;  %344 = vperm.xlu0 %810, %v336_v2   ;;  %v365_v4 = vld [vmem:[%s1181_s4] sm:$0xff]  ;;  %s1193_s18 = smov (!%p326_p13, %s745_s18), 3  ;;  %s749_s23 = sld [smem:[#allocation4 + $0x3]] }
  0x1b   : > { %v493_v12 = vld [vmem:[%s1183_s6] sm:$0xff]  ;;  %s328_s21 = scalar_lea.vmem %s1178_s1, %s1193_s18  ;;  %s748_s24 = sld [smem:[#allocation4 + $0x2]] }
  0x1c   : > { %v335_v16 = vld [vmem:[%s328_s21] sm:$0x3]  ;;  %s351_s25 = sld [smem:[#allocation4]]  ;;  %s333_s12 = scalar_lea.vmem %s1179_s2, %s1193_s18 }
  0x1d   : > { %v338_v17 = vperm.slane %v335_v16, 0  ;;  %v339_v18 = vperm.slane %v335_v16, 1  ;;  %s324_s20 = scalar_lea.vmem [#allocation7], %s323_s13  ;;  %s875_s10 = scalar_lea.hbm %s1185_s8, 2 }
  0x1e   : > { %s664_s21 = sshll.u32 %s324_s20, 4  ;;  %s665_s21 = int_to_ptr.vmem [resolvable:$true] %s664_s21 }
  0x1f   : > { %v355_v23 = vstv %s747_s22  ;;  %s666_s22 = sshll.u32 %s662_s19, 4  ;;  %s667_s22 = int_to_ptr.hbm [resolvable:$true] %s666_s22 }
  0x20   : > { %v483_v24 = vstv %s749_s23  ;;  %s654_s23 = scalar_lea.sflag [#allocation5], %s323_s13 }
  0x21   : > { %814 = vset.pattern.permute.xlu2 %v925_v5  ;;  %v1063_v42 = vstv %s748_s24  ;;  %s869_s24 = sshra.s32 %s667_s22, 4  ;;  %s870_s24 = int_to_ptr.hbm [resolvable:$true] %s869_s24 }
  0x22   : > { %812 = vset.pattern.permute.xlu1 %v925_v5  ;;  %368 = vperm.xlu0 %810, %v365_v4   ;;  %v1065_v44 = vstv %s351_s25  ;;  %s871_s25 = scalar_lea.hbm %s870_s24, 1  ;;  %p876_p3 = scmp.lt.s32.totalorder %s870_s24, %s1185_s8 }
  0x23   : > { %524 = vperm.xlu2 %814, %v513_v0   ;;  %396 = vperm.xlu1 %812, %v385_v1   ;;  %p872_p0 = scmp.ne.s32.totalorder %s870_s24, %s871_s25  ;;  %p877_p4 = scmp.lt.s32.totalorder %s875_s10, %s871_s25 }
  0x25   : > { %p873_p1 = pnand %p872_p0, %p1015_p5  ;;  %p878_p7 = por %p877_p4, %p876_p3 }
  0x27   : > { %p874_p2 = pneg %p873_p1 }
  0x29   : > { %p879_p8 = pnand %p878_p7, %p874_p2 }
  0x2a   : > { %815 = vset.pattern.permute.xlu0 %v926_v6 }
  0x2b   : > { %817 = vset.pattern.permute.xlu2 %v927_v7  ;;  %816 = vset.pattern.permute.xlu1 %v928_v8 }
  0x2c   : > { %534 = vperm.xlu0 %815, %v513_v0   ;;  %554 = vperm.xlu2 %817, %v513_v0  }
  0x2d   : > { %544 = vperm.xlu1 %816, %v513_v0  }
  0x34   : > { %820 = vset.pattern.permute.xlu0 %v929_v9  ;;  %819 = vset.pattern.permute.xlu2 %v926_v6 }
  0x35   : > { %818 = vset.pattern.permute.xlu1 %v930_v10  ;;  %574 = vperm.xlu0 %820, %v513_v0  }
  0x36   : > { %406 = vperm.xlu2 %819, %v385_v1   ;;  %564 = vperm.xlu1 %818, %v513_v0  }
  0x3d   : > { %446 = vperm.xlu0 %820, %v385_v1  }
  0x3e   : > { %822 = vset.pattern.permute.xlu2 %v931_v11  ;;  %821 = vset.pattern.permute.xlu1 %v928_v8 }
  0x3f   : > { %584 = vperm.xlu2 %822, %v513_v0   ;;  %416 = vperm.xlu1 %821, %v385_v1  }
  0x45   : > { %827 = vset.pattern.permute.xlu0 %v931_v11 }
  0x47   : > { %824 = vset.pattern.permute.xlu2 %v930_v10  ;;  %823 = vset.pattern.permute.xlu1 %v927_v7 }
  0x48   : > { %436 = vperm.xlu2 %824, %v385_v1   ;;  %426 = vperm.xlu1 %823, %v385_v1  }
  0x50   : > { %826 = vset.pattern.permute.xlu2 %v924_v3  ;;  %825 = vset.pattern.permute.xlu1 %v931_v11 }
  0x51   : > { %496 = vperm.xlu2 %826, %v493_v12   ;;  %456 = vperm.xlu1 %825, %v385_v1  }
  0x73   : > { %v517_v13 = vpop.permute.xlu2 %516 }
  0x7d   : > { %v525_v14 = vpop.permute.xlu2 %524 }
  0x86   : > { %v1051_v15 = vpop.permute.xlu2 %554 }
  0x8c   : > { %v1053_v19 = vpop.permute.xlu1 %388  ;;  %v345_v20 = vpop.permute.xlu0 %344 }
  0x8d   : > { %v347_v21 = vsub.f32 %v338_v17, %v345_v20  ;;  %v348_v22 = vsub.f32 %v339_v18, %v345_v20 }
  0x8f   : > { %v349_v25 = vmul.f32 %v347_v21, %v347_v21  ;;  %v350_v26 = vmul.f32 %v348_v22, %v348_v22 }
  0x90   : > { %v1055_v27 = vpop.permute.xlu2 %406 }
  0x91   : > { %v356_v28 = vmul.f32 %v355_v23, %v349_v25  ;;  %v357_v29 = vmul.f32 %v355_v23, %v350_v26  ;;  %v484_v30 = vmul.f32 %v483_v24, %v349_v25  ;;  %v485_v31 = vmul.f32 %v483_v24, %v350_v26 }
  0x93   : > { %v358_v32 = vmul.f32 1.442695, %v356_v28  ;;  %v360_v33 = vmul.f32 1.442695, %v357_v29  ;;  %v486_v34 = vmul.f32 1.442695, %v484_v30 }
  0x94   : > { %v488_v35 = vmul.f32 1.442695, %v485_v31  ;;  %v1061_v39 = vpop.permute.xlu0 %368 }
  0x95   : > { %828 = vpow2.f32 %v358_v32  ;;  %v1057_v36 = vpop.permute.xlu1 %396 }
  0x96   : > { %830 = vpow2.f32 %v360_v33 }
  0x97   : > { %832 = vpow2.f32 %v486_v34 }
  0x98   : > { %834 = vpow2.f32 %v488_v35 }
  0x99   : > { %v1059_v37 = vpop.permute.xlu2 %584 }
  0x9b   : > { %v829_v38 = vpop.eup %828 }
  0x9c   : > { %v831_v40 = vpop.eup %830  ;;  %v1071_v47 = vmul.f32 %v829_v38, %v1065_v44 }
  0x9d   : > { %v833_v41 = vpop.eup %832  ;;  %v1074_v48 = vmul.f32 %v831_v40, %v1065_v44 }
  0x9e   : > { %v835_v43 = vpop.eup %834  ;;  %v1068_v46 = vmul.f32 %v833_v41, %v1063_v42  ;;  %v391_v52 = vperm.slane %v1071_v47, 0  ;;  %v399_v54 = vperm.slane %v1071_v47, 1  ;;  %v535_v55 = vpop.permute.xlu0 %534  ;;  %v409_v4 = vperm.slane %v1071_v47, 2 }
  0x9f   : > { %v545_v45 = vpop.permute.xlu1 %544  ;;  %v1077_v49 = vmul.f32 %v835_v43, %v1063_v42  ;;  %v392_v53 = vperm.slane %v1074_v48, 0  ;;  %v410_v5 = vperm.slane %v1074_v48, 2  ;;  %v400_v9 = vperm.slane %v1074_v48, 1 }
  0xa0   : > { %v519_v51 = vperm.slane %v1068_v46, 0  ;;  %v547_v57 = vperm.slane %v1068_v46, 3  ;;  %v527_v59 = vperm.slane %v1068_v46, 1  ;;  %v537_v63 = vperm.slane %v1068_v46, 2 }
  0xa1   : > { %v520_v56 = vperm.slane %v1077_v49, 0  ;;  %v528_v60 = vperm.slane %v1077_v49, 1  ;;  %v548_v61 = vperm.slane %v1077_v49, 3  ;;  %v538_v0 = vperm.slane %v1077_v49, 2 }
  0xa2   : > { %v1079_v50 = vpop.permute.xlu2 %436  ;;  %v521_v58 = vmul.f32 %v519_v51, %v517_v13  ;;  %v529_v1 = vmul.f32 %v527_v59, %v525_v14  ;;  %v539_v6 = vmul.f32 %v537_v63, %v535_v55  ;;  %v393_v8 = vmul.f32 %v391_v52, %v1053_v19 }
  0xa3   : > { %v522_v62 = vmul.f32 %v520_v56, %v517_v13  ;;  %v530_v2 = vmul.f32 %v528_v60, %v525_v14  ;;  %v540_v7 = vmul.f32 %v538_v0, %v535_v55  ;;  %v394_v12 = vmul.f32 %v392_v53, %v1053_v19 }
  0xa4   : > { %v531_v10 = vadd.f32 %v529_v1, %v521_v58  ;;  %v401_v13 = vmul.f32 %v399_v54, %v1057_v36  ;;  %v549_v16 = vmul.f32 %v547_v57, %v545_v45  ;;  %v550_v17 = vmul.f32 %v548_v61, %v545_v45 }
  0xa5   : > { %v532_v11 = vadd.f32 %v530_v2, %v522_v62  ;;  %v577_v20 = vperm.slane %v1068_v46, 6  ;;  %v557_v21 = vperm.slane %v1068_v46, 4  ;;  %v372_v23 = vmul.f32 %v1061_v39, %v1074_v48 }
  0xa6   : > { %v541_v14 = vadd.f32 %v539_v6, %v531_v10  ;;  %v587_v24 = vperm.slane %v1068_v46, 7  ;;  %v578_v25 = vperm.slane %v1077_v49, 6  ;;  %v558_v19 = vperm.slane %v1077_v49, 4 }
  0xa7   : > { %v542_v18 = vadd.f32 %v540_v7, %v532_v11  ;;  %v559_v29 = vmul.f32 %v557_v21, %v1051_v15  ;;  %v567_v30 = vperm.slane %v1068_v46, 5  ;;  %v588_v31 = vperm.slane %v1077_v49, 7  ;;  %v575_v32 = vpop.permute.xlu0 %574 }
  0xa8   : > { %v565_v3 = vpop.permute.xlu1 %564  ;;  %v551_v26 = vadd.f32 %v549_v16, %v541_v14  ;;  %v560_v33 = vmul.f32 %v558_v19, %v1051_v15  ;;  %v568_v34 = vperm.slane %v1077_v49, 5  ;;  %v579_v38 = vmul.f32 %v577_v20, %v575_v32 }
  0xa9   : > { %v552_v28 = vadd.f32 %v550_v17, %v542_v18  ;;  %v569_v41 = vmul.f32 %v567_v30, %v565_v3  ;;  %v402_v45 = vmul.f32 %v400_v9, %v1057_v36  ;;  %v580_v51 = vmul.f32 %v578_v25, %v575_v32 }
  0xaa   : > { %v561_v40 = vadd.f32 %v559_v29, %v551_v26  ;;  %v570_v53 = vmul.f32 %v568_v34, %v565_v3  ;;  %v589_v55 = vmul.f32 %v587_v24, %v1059_v37  ;;  %v379_v58 = vrot.slane %v372_v23, 4 }
  0xab   : > { %v497_v22 = vpop.permute.xlu2 %496  ;;  %v562_v52 = vadd.f32 %v560_v33, %v552_v28  ;;  %v590_v59 = vmul.f32 %v588_v31, %v1059_v37  ;;  %v411_v61 = vmul.f32 %v409_v4, %v1055_v27  ;;  %v412_v62 = vmul.f32 %v410_v5, %v1055_v27 }
  0xac   : > { %v499_v35 = vmul.f32 %v497_v22, %v1068_v46  ;;  %v500_v43 = vmul.f32 %v497_v22, %v1077_v49  ;;  %v571_v56 = vadd.f32 %v569_v41, %v561_v40  ;;  %v403_v0 = vadd.f32 %v401_v13, %v393_v8 }
  0xad   : > { %v572_v60 = vadd.f32 %v570_v53, %v562_v52  ;;  %v404_v36 = vadd.f32 %v402_v45, %v394_v12  ;;  %v419_v2 = vperm.slane %v1071_v47, 3  ;;  %v420_v9 = vperm.slane %v1074_v48, 3 }
  0xae   : > { %v501_v57 = vrot.slane %v499_v35, 4  ;;  %v507_v15 = vrot.slane %v500_v43, 4  ;;  %v581_v63 = vadd.f32 %v579_v38, %v571_v56  ;;  %v371_v10 = vmul.f32 %v1061_v39, %v1071_v47 }
  0xaf   : > { %v582_v1 = vadd.f32 %v580_v51, %v572_v60  ;;  %v380_v37 = vadd.f32 %v379_v58, %v372_v23  ;;  %v439_v4 = vperm.slane %v1071_v47, 5  ;;  %v440_v27 = vperm.slane %v1074_v48, 5 }
  0xb0   : > { %v591_v3 = vadd.f32 %v589_v55, %v581_v63  ;;  %v502_v6 = vadd.f32 %v501_v57, %v499_v35  ;;  %v508_v7 = vadd.f32 %v507_v15, %v500_v43  ;;  %v413_v13 = vadd.f32 %v411_v61, %v403_v0  ;;  %v447_v35 = vpop.permute.xlu0 %446 }
  0xb1   : > { %v417_v54 = vpop.permute.xlu1 %416  ;;  %v592_v11 = vadd.f32 %v590_v59, %v582_v1  ;;  %v429_v17 = vperm.slane %v1071_v47, 4  ;;  %v430_v14 = vperm.slane %v1074_v48, 4  ;;  %v414_v21 = vadd.f32 %v412_v62, %v404_v36 }
  0xb2   : > { %v421_v16 = vmul.f32 %v419_v2, %v417_v54  ;;  %v593_v5 = vmul.f32 %v591_v3, %v1068_v46  ;;  %v422_v8 = vmul.f32 %v420_v9, %v417_v54  ;;  %v503_v20 = vrot.slane %v502_v6, 2 }
  0xb3   : > { %v594_v12 = vmul.f32 %v592_v11, %v1077_v49  ;;  %v509_v39 = vrot.slane %v508_v7, 2  ;;  %v373_v26 = vrot.slane %v371_v10, 4  ;;  %v381_v28 = vrot.slane %v380_v37, 2 }
  0xb4   : > { %v595_v18 = vrot.slane %v593_v5, 4  ;;  %v423_v24 = vadd.f32 %v421_v16, %v413_v13  ;;  %v424_v29 = vadd.f32 %v422_v8, %v414_v21  ;;  %v441_v49 = vmul.f32 %v439_v4, %v1079_v50 }
  0xb5   : > { %v601_v23 = vrot.slane %v594_v12, 4  ;;  %v449_v31 = vperm.slane %v1071_v47, 6  ;;  %v442_v33 = vmul.f32 %v440_v27, %v1079_v50  ;;  %v450_v38 = vperm.slane %v1074_v48, 6 }
  0xb6   : > { %v596_v46 = vadd.f32 %v595_v18, %v593_v5  ;;  %v504_v43 = vadd.f32 %v503_v20, %v502_v6  ;;  %v510_v45 = vadd.f32 %v509_v39, %v508_v7  ;;  %v374_v54 = vadd.f32 %v373_v26, %v371_v10 }
  0xb7   : > { %v602_v30 = vadd.f32 %v601_v23, %v594_v12  ;;  %v382_v55 = vadd.f32 %v381_v28, %v380_v37  ;;  %v451_v57 = vmul.f32 %v449_v31, %v447_v35  ;;  %v452_v58 = vmul.f32 %v450_v38, %v447_v35 }
  0xb8   : > { %v597_v34 = vrot.slane %v596_v46, 2  ;;  %v459_v59 = vperm.slane %v1071_v47, 7  ;;  %v460_v50 = vperm.slane %v1074_v48, 7  ;;  %v505_v61 = vrot.slane %v504_v43, 1 }
  0xb9   : > { %v603_v41 = vrot.slane %v602_v30, 2  ;;  %v511_v62 = vrot.slane %v510_v45, 1  ;;  %v375_v7 = vrot.slane %v374_v54, 2  ;;  %v383_v11 = vrot.slane %v382_v55, 1 }
  0xba   : > { %v427_v22 = vpop.permute.xlu1 %426  ;;  %v598_v52 = vadd.f32 %v597_v34, %v596_v46  ;;  %v506_v16 = vadd.f32 %v505_v61, %v504_v43  ;;  %v611_v34 = vld [vmem:[%s333_s12] sm:$0x3] }
  0xbb   : > { %v431_v25 = vmul.f32 %v429_v17, %v427_v22  ;;  %v432_v19 = vmul.f32 %v430_v14, %v427_v22  ;;  %v604_v56 = vadd.f32 %v603_v41, %v602_v30  ;;  %v512_v27 = vadd.f32 %v511_v62, %v510_v45 }
  0xbc   : > { %v599_v15 = vrot.slane %v598_v52, 1  ;;  %v376_v17 = vadd.f32 %v375_v7, %v374_v54  ;;  %v616_v39 = vsub.f32 0.0, %v506_v16  ;;  %v384_v22 = vadd.f32 %v383_v11, %v382_v55 }
  0xbd   : > { %v433_v32 = vadd.f32 %v431_v25, %v423_v24  ;;  %v434_v40 = vadd.f32 %v432_v19, %v424_v29  ;;  %v605_v60 = vrot.slane %v604_v56, 1  ;;  %v617_v23 = vsub.f32 0.0, %v512_v27 }
  0xbe   : > { %v600_v36 = vadd.f32 %v599_v15, %v598_v52  ;;  %v612_v15 = vmul.f32 0.5, %v506_v16 }
  0xbf   : > { %v443_v51 = vadd.f32 %v441_v49, %v433_v32  ;;  %v444_v53 = vadd.f32 %v442_v33, %v434_v40  ;;  %v606_v6 = vadd.f32 %v605_v60, %v604_v56 }
  0xc0   : > { %v607_v9 = vadd.f32 %v600_v36, %v1063_v42 }
  0xc1   : > { %v453_v0 = vadd.f32 %v451_v57, %v443_v51  ;;  %v454_v1 = vadd.f32 %v452_v58, %v444_v53  ;;  %v608_v4 = vadd.f32 %v606_v6, %v1063_v42  ;;  %v377_v42 = vrot.slane %v376_v17, 1 }
  0xc2   : > { %v609_v5 = vmax.f32 %v607_v9, 1e-08  ;;  %v613_v58 = vmul.f32 0.5, %v512_v27 }
  0xc3   : > { %v457_v63 = vpop.permute.xlu1 %456  ;;  %v610_v13 = vmax.f32 %v608_v4, 1e-08  ;;  %v378_v30 = vadd.f32 %v377_v42, %v376_v17 }
  0xc4   : > { %v461_v2 = vmul.f32 %v459_v59, %v457_v63  ;;  %v462_v3 = vmul.f32 %v460_v50, %v457_v63  ;;  %v618_v14 = vmul.f32 0.5, %v609_v5  ;;  %v615_v63 = vsub.f32 -0.9189385, %v613_v58 }
  0xc5   : > { %v619_v21 = vmul.f32 0.5, %v610_v13 }
  0xc6   : > { %v463_v10 = vadd.f32 %v461_v2, %v453_v0  ;;  %v464_v37 = vadd.f32 %v462_v3, %v454_v1  ;;  %v620_v19 = vadd.f32 %v618_v14, %v616_v39 }
  0xc7   : > { %v621_v26 = vadd.f32 %v619_v21, %v617_v23 }
  0xc8   : > { %v465_v8 = vmul.f32 %v463_v10, %v1071_v47  ;;  %v466_v12 = vmul.f32 %v464_v37, %v1074_v48  ;;  %v630_v47 = vrot.slane %v384_v22, 7  ;;  %v622_v49 = vmul.f32 1.442695, %v620_v19 }
  0xc9   : > { %v624_v31 = vmul.f32 1.442695, %v621_v26 }
  0xca   : > { %v467_v18 = vrot.slane %v465_v8, 4  ;;  %v473_v20 = vrot.slane %v466_v12, 4  ;;  %v632_v35 = vsel %vm631_vm0, %v378_v30, %v630_v47  ;;  %836 = vpow2.f32 %v622_v49 }
  0xcb   : > { %838 = vpow2.f32 %v624_v31  ;;  %v634_v45 = vsub.f32 %v611_v34, %v632_v35 }
  0xcc   : > { %v468_v24 = vadd.f32 %v467_v18, %v465_v8  ;;  %v474_v25 = vadd.f32 %v473_v20, %v466_v12 }
  0xcd   : > { %v635_v55 = vmul.f32 %v634_v45, %v634_v45 }
  0xce   : > { %v469_v28 = vrot.slane %v468_v24, 2  ;;  %v475_v46 = vrot.slane %v474_v25, 2 }
  0xd0   : > { %v470_v29 = vadd.f32 %v469_v28, %v468_v24  ;;  %v476_v48 = vadd.f32 %v475_v46, %v474_v25  ;;  %v837_v54 = vpop.eup %836 }
  0xd1   : > { %v839_v56 = vpop.eup %838  ;;  %v626_v50 = vmul.f32 0.5, %v837_v54 }
  0xd2   : > { %v471_v32 = vrot.slane %v470_v29, 1  ;;  %v477_v33 = vrot.slane %v476_v48, 1  ;;  %v627_v60 = vmul.f32 0.5, %v839_v56 }
  0xd4   : > { %v472_v38 = vadd.f32 %v471_v32, %v470_v29  ;;  %v478_v40 = vadd.f32 %v477_v33, %v476_v48 }
  0xd6   : > { %v479_v41 = vadd.f32 %v472_v38, %v1065_v44  ;;  %v480_v43 = vadd.f32 %v478_v40, %v1065_v44  ;;  %v614_v44 = vsub.f32 -0.9189385, %v612_v15 }
  0xd8   : > { %v482_v51 = vmax.f32 %v480_v43, 1e-08  ;;  %v481_v52 = vmax.f32 %v479_v41, 1e-08 }
  0xda   : > { %v638_v53 = vrot.slane %v482_v51, 7 }
  0xdc   : > { %v639_v57 = vsel %vm631_vm0, %v481_v52, %v638_v53 }
  0xdd   : > { %v641_v59 = vadd.f32 %v639_v57, %v635_v55 }
  0xdf   : > { %v643_v61 = vperm.slane %v641_v59, 0  ;;  %v644_v62 = vperm.slane %v641_v59, 1 }
  0xe1   : > { %v647_v0 = vmul.f32 %v643_v61, %v626_v50  ;;  %v648_v36 = vmul.f32 %v644_v62, %v627_v60 }
  0xe3   : > { %v649_v1 = vsub.f32 %v614_v44, %v647_v0  ;;  %v650_v2 = vsub.f32 %v615_v63, %v648_v36 }
  0xe5   : > { %v651_v3 = vadd.f32 %v650_v2, %v649_v1 }
  0xe7   : > { %652 = vst [vmem:[%s324_s20] sm:$0x1] %v651_v3 }
  0xe8   : > { %882 = shalt.err (!%p879_p8)
}
  0xe9   : > { %756 = dma.vmem_to_hbm [thread:$0]  (%p1015_p5), %s665_s21, 16, %s667_s22, %s654_s23  }
  0xea PF: > { %p768_p9 = scmp.ge.s32.totalorder %s921_s30, 2  ;;  %s678_s13 = sand.u32 1, %s909_s27  }
  0xeb   : > { %s679_s18 = scalar_lea.sflag [#allocation5], %s678_s13 }
  0xec   : > { %p763_p10 = pnand %p768_p9, %p1019_p6 }
  0xee   : > { %p764_p11 = pneg %p763_p10 }
  0xf0   : > { %904 = dma.done.wait (%p764_p11), %s679_s18, 16  }
  0xf1   : > { %906 = vsyncadd (%p764_p11), %s679_s18, 4294967280  ;;  %p19_p12 = scmp.ge.s32.totalorder %s1002_s11, 4   ;;  %s1188_s27 = smov %s913_s28 }
  0xf2   : > { %s1189_s28 = smov %s917_s29  ;;  %s1190_s29 = smov %s1013_s14 }
  0xf3   : > { %s1191_s30 = smov %s1002_s11  ;;  %21 = sbr.rel (!%p19_p12) target bundleno = 4 (0x4), region = 95 }
  0xf8   :  { %684 = vsyncpa [#allocation5], 1 }
  0xf9   :  { %686 = vsyncpa [#allocation5 + $0x1], 1 }
  0xfa   :  { %687 = vsyncpa [#allocation6], 1 }
  0xfb   :  { %689 = vsyncpa [#allocation6 + $0x1], 1 }

</bundles_post_ra>
